<compile_context>
chip_gen: v7x
topology: tpu7x:2x2x1
jax: 0.10.0
libtpu: 0.0.40
codegen_flags: <defaults>
</compile_context>

<pallas_src>
import jax
import jax.numpy as jnp
from jax.experimental import pallas as pl
from jax.experimental.pallas import tpu as pltpu

LANES = 128


def _detect_num_tensorcores():
    """Trace-time TensorCore count: 2 on v7x-style 2-TC chips, else 1."""
    try:
        kind = jax.devices()[0].device_kind.lower()
    except Exception:
        return 1
    return 2 if ("v7" in kind or "7x" in kind) else 1


def _make_dice_kernel(rows, tile_r, inner, needs_mask):
    """Build the kernel with all sizes baked in as Python constants."""
    folds = tile_r // 8  # tile_r is always a multiple of 8

    def kernel(yt_ref, yp_ref, out_ref, acc_s_ref, acc_p_ref):
        c = pl.program_id(0)   # core split axis
        s = pl.program_id(1)   # row-tile step ("arbitrary" reduction axis)

        @pl.when(s == 0)
        def _init():
            acc_s_ref[...] = jnp.zeros_like(acc_s_ref)
            acc_p_ref[...] = jnp.zeros_like(acc_p_ref)

        def accumulate(yt, yp):
            # Fold (tile_r, 128) -> (8, 128): the reshape is (8,128)-tile
            # aligned (free) and the axis-0 sum is cross-vreg VALU adds (no
            # XLU), so the accumulator RMW touches only 2 vregs per step.
            acc_s_ref[...] += jnp.sum((yt + yp).reshape(folds, 8, LANES), axis=0)
            acc_p_ref[...] += jnp.sum((yt * yp).reshape(folds, 8, LANES), axis=0)

        if needs_mask:
            t = c * inner + s                   # unclamped global tile index
            is_edge = (t + 1) * tile_r > rows   # ragged tail or clamped dummy

            @pl.when(jnp.logical_not(is_edge))
            def _full_tile():
                accumulate(yt_ref[...].astype(jnp.float32),
                           yp_ref[...].astype(jnp.float32))

            @pl.when(is_edge)
            def _edge_tile():
                # Zero rows beyond the valid range (ragged last tile and/or
                # clamped duplicate tiles on the last core). Pure VPU work,
                # only paid on edge tiles.
                row_idx = jax.lax.broadcasted_iota(jnp.int32, (tile_r, LANES), 0)
                valid_rows = rows - t * tile_r   # may be <= 0 for dummy tiles
                m = row_idx < valid_rows
                yt = jnp.where(m, yt_ref[...].astype(jnp.float32), 0.0)
                yp = jnp.where(m, yp_ref[...].astype(jnp.float32), 0.0)
                accumulate(yt, yp)
        else:
            accumulate(yt_ref[...].astype(jnp.float32),
                       yp_ref[...].astype(jnp.float32))

        @pl.when(s == pl.num_programs(1) - 1)
        def _finalize():
            out_ref[0, 0] = acc_s_ref[...]   # per-core partial of sum(yt)+sum(yp)
            out_ref[0, 1] = acc_p_ref[...]   # per-core partial of sum(yt*yp)

    return kernel


def dice_bce_loss_forward(y_pred, y_true, *, tile_rows=2048):
    """Pallas implementation of dice_bce_loss(batch=True).forward(y_pred, y_true)."""
    assert y_pred.shape == y_true.shape
    total = int(y_pred.size)
    num_cores = _detect_num_tensorcores()

    yp_flat = y_pred.reshape(-1)   # reshape only: no copy, native dtype
    yt_flat = y_true.reshape(-1)

    rem = total % LANES
    if rem != 0:
        # Rare fallback (numel not a multiple of 128): pad the flat tail with
        # zeros (neutral for all accumulated sums).
        # TODO(synk): handle the <128-element ragged lane tail in-kernel to
        # avoid this copy for non-lane-aligned inputs.
        pad = LANES - rem
        yp_flat = jnp.pad(yp_flat, (0, pad))
        yt_flat = jnp.pad(yt_flat, (0, pad))
    rows = (total + LANES - 1) // LANES

    yp2 = yp_flat.reshape(rows, LANES)   # free relayout to lane-dense (rows, 128)
    yt2 = yt_flat.reshape(rows, LANES)

    # Tile sizing: big streaming tiles, capped at one core's share of the rows.
    per_core_rows = -(-rows // num_cores)
    tile_r = min(int(tile_rows), max(8, ((per_core_rows + 7) // 8) * 8))
    if num_cores > 1:
        # Prefer a tile size whose tile count splits evenly across cores so no
        # clamped dummy tile has to be re-read and masked (wasted HBM bytes).
        for cand in range(tile_r, 7, -8):
            if (-(-rows // cand)) % num_cores == 0:
                tile_r = cand
                break
    num_tiles = -(-rows // tile_r)
    inner = -(-num_tiles // num_cores)
    needs_mask = (num_tiles * tile_r != rows) or (inner * num_cores != num_tiles)

    def in_map(c, s):
        # Clamp so any dummy tile (uneven core split) re-reads a valid block;
        # the kernel masks it to zero.
        return (jnp.minimum(c * inner + s, num_tiles - 1), 0)

    def make_in_spec():
        if num_tiles >= 3:
            # Deeper input pipelining: this is a DMA-bound streaming reduction.
            return pl.BlockSpec((tile_r, LANES), in_map,
                                pipeline_mode=pl.Buffered(3))
        return pl.BlockSpec((tile_r, LANES), in_map)

    kernel = _make_dice_kernel(rows, tile_r, inner, needs_mask)

    if num_cores > 1:
        # Only core_parallel actually changes codegen for the cross-TC split.
        core_sem = getattr(pltpu, "CORE_PARALLEL", pltpu.PARALLEL)
        dim_sem = (core_sem, pltpu.ARBITRARY)
    else:
        dim_sem = ("arbitrary", "arbitrary")

    partials = pl.pallas_call(
        kernel,
        out_shape=jax.ShapeDtypeStruct((num_cores, 2, 8, LANES), jnp.float32),
        grid_spec=pltpu.PrefetchScalarGridSpec(
            num_scalar_prefetch=0,
            grid=(num_cores, inner),
            in_specs=[make_in_spec(), make_in_spec()],
            out_specs=pl.BlockSpec((1, 2, 8, LANES), lambda c, s: (c, 0, 0, 0)),
            scratch_shapes=[
                pltpu.VMEM((8, LANES), jnp.float32),   # sum(y_true) + sum(y_pred)
                pltpu.VMEM((8, LANES), jnp.float32),   # intersection
            ],
        ),
        compiler_params=pltpu.CompilerParams(
            dimension_semantics=dim_sem,
            vmem_limit_bytes=32 * 1024 * 1024,
        ),
    )(yt2, yp2)

    sum_ij = jnp.sum(partials[:, 0])        # sum(y_true) + sum(y_pred)
    intersection = jnp.sum(partials[:, 1])  # sum(y_true * y_pred)
    smooth = 0.0                            # matches PyTorch reference (NaN if sums are 0)
    score = (2.0 * intersection + smooth) / (sum_ij + smooth)
    return (1.0 - score).astype(jnp.float32)   # soft_dice_loss


def _reference(y_pred, y_true):
    yt = y_true.astype(jnp.float32)
    yp = y_pred.astype(jnp.float32)
    return 1.0 - (2.0 * jnp.sum(yt * yp)) / (jnp.sum(yt) + jnp.sum(yp))


if __name__ == "__main__":
    key = jax.random.PRNGKey(0)
    k1, k2, k3, k4, k5, k6 = jax.random.split(key, 6)

    # NCHW, like the PyTorch module would receive (sigmoid probs + binary mask).
    shape = (2, 4, 16, 16)
    y_pred = jax.nn.sigmoid(jax.random.normal(k1, shape, dtype=jnp.float32))
    y_true = (jax.random.uniform(k2, shape, dtype=jnp.float32) > 0.5).astype(
        jnp.float32
    )
    loss = jax.block_until_ready(dice_bce_loss_forward(y_pred, y_true))
    ref = _reference(y_pred, y_true)
    assert jnp.allclose(loss, ref, rtol=1e-5, atol=1e-6), (loss, ref)

    # Exercises the masked edge-tile path (rows = 1152/128 = 9, ragged vs tile).
    shape2 = (1, 3, 24, 16)
    y_pred2 = jax.nn.sigmoid(jax.random.normal(k3, shape2, dtype=jnp.float32))
    y_true2 = (jax.random.uniform(k4, shape2, dtype=jnp.float32) > 0.5).astype(
        jnp.float32
    )
    loss2 = jax.block_until_ready(dice_bce_loss_forward(y_pred2, y_true2))
    ref2 = _reference(y_pred2, y_true2)
    assert jnp.allclose(loss2, ref2, rtol=1e-5, atol=1e-6), (loss2, ref2)

    # Exercises multi-tile accumulation, the Buffered(3) input pipeline and the
    # gated mask (rows = 75, tile_r = 32 -> 2 full tiles + 1 ragged tile).
    shape3 = (2, 3, 40, 40)
    y_pred3 = jax.nn.sigmoid(jax.random.normal(k5, shape3, dtype=jnp.float32))
    y_true3 = (jax.random.uniform(k6, shape3, dtype=jnp.float32) > 0.5).astype(
        jnp.float32
    )
    loss3 = jax.block_until_ready(
        dice_bce_loss_forward(y_pred3, y_true3, tile_rows=32)
    )
    ref3 = _reference(y_pred3, y_true3)
    assert jnp.allclose(loss3, ref3, rtol=1e-5, atol=1e-6), (loss3, ref3)

    print("KERNEL_OK")
</pallas_src>

<mosaic_0001>
module attributes {stable_mosaic.version = 11 : i64} {
  func.func @kernel(%arg0: i32, %arg1: i32, %arg2: memref<16x128xf32, #tpu.memory_space<vmem>>, %arg3: memref<16x128xf32, #tpu.memory_space<vmem>>, %arg4: memref<1x2x8x128xf32, #tpu.memory_space<vmem>>, %arg5: memref<8x128xf32, #tpu.memory_space<vmem>>, %arg6: memref<8x128xf32, #tpu.memory_space<vmem>>) attributes {dimension_semantics = [#tpu.dimension_semantics<arbitrary>, #tpu.dimension_semantics<arbitrary>], iteration_bounds = array<i64: 1, 1>, scalar_prefetch = 0 : i64, scratch_operands = 2 : i64, tpu.core_type = #tpu.core_type<tc>, window_params = [{transform_indices = @transform_0, window_bounds = array<i64: 16, 128>}, {transform_indices = @transform_1, window_bounds = array<i64: 16, 128>}, {transform_indices = @transform_2, window_bounds = array<i64: 1, 2, 8, 128>}]} {
    %c0_i32 = arith.constant 0 : i32
    %0 = arith.cmpi eq, %arg1, %c0_i32 : i32
    %1 = arith.extui %0 : i1 to i32
    %c0_i32_0 = arith.constant 0 : i32
    %2 = arith.cmpi ne, %1, %c0_i32_0 : i32
    scf.if %2 {
      %cst_15 = arith.constant 0.000000e+00 : f32
      %20 = vector.broadcast %cst_15 : f32 to vector<8x128xf32>
      %c0_16 = arith.constant 0 : index
      %c0_17 = arith.constant 0 : index
      %21 = vector.load %arg5[%c0_16, %c0_17] : memref<8x128xf32, #tpu.memory_space<vmem>>, vector<8x128xf32>
      tpu.vector_store %arg5[%c0_16, %c0_17], %20 {strides = array<i32>} : memref<8x128xf32, #tpu.memory_space<vmem>>, vector<8x128xf32>,
      %cst_18 = arith.constant 0.000000e+00 : f32
      %22 = vector.broadcast %cst_18 : f32 to vector<8x128xf32>
      %c0_19 = arith.constant 0 : index
      %c0_20 = arith.constant 0 : index
      %23 = vector.load %arg6[%c0_19, %c0_20] : memref<8x128xf32, #tpu.memory_space<vmem>>, vector<8x128xf32>
      tpu.vector_store %arg6[%c0_19, %c0_20], %22 {strides = array<i32>} : memref<8x128xf32, #tpu.memory_space<vmem>>, vector<8x128xf32>,
    } else {
    }
    %c0 = arith.constant 0 : index
    %c0_1 = arith.constant 0 : index
    %3 = vector.load %arg2[%c0, %c0_1] : memref<16x128xf32, #tpu.memory_space<vmem>>, vector<16x128xf32>
    %c0_2 = arith.constant 0 : index
    %c0_3 = arith.constant 0 : index
    %4 = vector.load %arg3[%c0_2, %c0_3] : memref<16x128xf32, #tpu.memory_space<vmem>>, vector<16x128xf32>
    %c0_4 = arith.constant 0 : index
    %c0_5 = arith.constant 0 : index
    %5 = vector.load %arg5[%c0_4, %c0_5] : memref<8x128xf32, #tpu.memory_space<vmem>>, vector<8x128xf32>
    %6 = arith.addf %3, %4 : vector<16x128xf32>
    %7 = vector.shape_cast %6 : vector<16x128xf32> to vector<2x8x128xf32>
    %cst = arith.constant dense<0.000000e+00> : vector<8x128xf32>
    %8 = vector.multi_reduction <add>, %7, %cst [0] : vector<2x8x128xf32> to vector<8x128xf32>
    %9 = arith.addf %5, %8 : vector<8x128xf32>
    %c0_6 = arith.constant 0 : index
    %c0_7 = arith.constant 0 : index
    %10 = vector.load %arg5[%c0_6, %c0_7] : memref<8x128xf32, #tpu.memory_space<vmem>>, vector<8x128xf32>
    tpu.vector_store %arg5[%c0_6, %c0_7], %9 {strides = array<i32>} : memref<8x128xf32, #tpu.memory_space<vmem>>, vector<8x128xf32>,
    %c0_8 = arith.constant 0 : index
    %c0_9 = arith.constant 0 : index
    %11 = vector.load %arg6[%c0_8, %c0_9] : memref<8x128xf32, #tpu.memory_space<vmem>>, vector<8x128xf32>
    %12 = arith.mulf %3, %4 : vector<16x128xf32>
    %13 = vector.shape_cast %12 : vector<16x128xf32> to vector<2x8x128xf32>
    %cst_10 = arith.constant dense<0.000000e+00> : vector<8x128xf32>
    %14 = vector.multi_reduction <add>, %13, %cst_10 [0] : vector<2x8x128xf32> to vector<8x128xf32>
    %15 = arith.addf %11, %14 : vector<8x128xf32>
    %c0_11 = arith.constant 0 : index
    %c0_12 = arith.constant 0 : index
    %16 = vector.load %arg6[%c0_11, %c0_12] : memref<8x128xf32, #tpu.memory_space<vmem>>, vector<8x128xf32>
    tpu.vector_store %arg6[%c0_11, %c0_12], %15 {strides = array<i32>} : memref<8x128xf32, #tpu.memory_space<vmem>>, vector<8x128xf32>,
    %c0_i32_13 = arith.constant 0 : i32
    %17 = arith.cmpi eq, %arg1, %c0_i32_13 : i32
    %18 = arith.extui %17 : i1 to i32
    %c0_i32_14 = arith.constant 0 : i32
    %19 = arith.cmpi ne, %18, %c0_i32_14 : i32
    scf.if %19 {
      %c0_15 = arith.constant 0 : index
      %c0_16 = arith.constant 0 : index
      %20 = vector.load %arg5[%c0_15, %c0_16] : memref<8x128xf32, #tpu.memory_space<vmem>>, vector<8x128xf32>
      %c0_17 = arith.constant 0 : index
      %c0_18 = arith.constant 0 : index
      %c0_19 = arith.constant 0 : index
      %c0_20 = arith.constant 0 : index
      %21 = vector.load %arg4[%c0_17, %c0_18, %c0_19, %c0_20] : memref<1x2x8x128xf32, #tpu.memory_space<vmem>>, vector<1x1x8x128xf32>
      %22 = vector.shape_cast %21 : vector<1x1x8x128xf32> to vector<8x128xf32>
      %23 = vector.shape_cast %20 : vector<8x128xf32> to vector<1x1x8x128xf32>
      tpu.vector_store %arg4[%c0_17, %c0_18, %c0_19, %c0_20], %23 {strides = array<i32>} : memref<1x2x8x128xf32, #tpu.memory_space<vmem>>, vector<1x1x8x128xf32>,
      %c0_21 = arith.constant 0 : index
      %c0_22 = arith.constant 0 : index
      %24 = vector.load %arg6[%c0_21, %c0_22] : memref<8x128xf32, #tpu.memory_space<vmem>>, vector<8x128xf32>
      %c0_23 = arith.constant 0 : index
      %c1 = arith.constant 1 : index
      %c0_24 = arith.constant 0 : index
      %c0_25 = arith.constant 0 : index
      %25 = vector.load %arg4[%c0_23, %c1, %c0_24, %c0_25] : memref<1x2x8x128xf32, #tpu.memory_space<vmem>>, vector<1x1x8x128xf32>
      %26 = vector.shape_cast %25 : vector<1x1x8x128xf32> to vector<8x128xf32>
      %27 = vector.shape_cast %24 : vector<8x128xf32> to vector<1x1x8x128xf32>
      tpu.vector_store %arg4[%c0_23, %c1, %c0_24, %c0_25], %27 {strides = array<i32>} : memref<1x2x8x128xf32, #tpu.memory_space<vmem>>, vector<1x1x8x128xf32>,
    } else {
    }
    return
  }
  func.func @transform_0(%arg0: i32, %arg1: i32) -> (i32, i32) {
    %c1_i32 = arith.constant 1 : i32
    %0 = arith.muli %arg0, %c1_i32 : i32
    %1 = arith.addi %0, %arg1 : i32
    %c0_i32 = arith.constant 0 : i32
    %2 = arith.minsi %1, %c0_i32 : i32
    %c0_i32_0 = arith.constant 0 : i32
    %c0_i32_1 = arith.constant 0 : i32
    return %2, %c0_i32_0 : i32, i32
  }
  func.func @transform_1(%arg0: i32, %arg1: i32) -> (i32, i32) {
    %c1_i32 = arith.constant 1 : i32
    %0 = arith.muli %arg0, %c1_i32 : i32
    %1 = arith.addi %0, %arg1 : i32
    %c0_i32 = arith.constant 0 : i32
    %2 = arith.minsi %1, %c0_i32 : i32
    %c0_i32_0 = arith.constant 0 : i32
    %c0_i32_1 = arith.constant 0 : i32
    return %2, %c0_i32_0 : i32, i32
  }
  func.func @transform_2(%arg0: i32, %arg1: i32) -> (i32, i32, i32, i32) {
    %c0_i32 = arith.constant 0 : i32
    %c0_i32_0 = arith.constant 0 : i32
    %c0_i32_1 = arith.constant 0 : i32
    %c0_i32_2 = arith.constant 0 : i32
    return %arg0, %c0_i32, %c0_i32_0, %c0_i32_1 : i32, i32, i32, i32
  }
}

</mosaic_0001>

<bundles_post_ra>
// kernel: tpu_custom_call.1
= control target key start
LH: loop header
LB: loop body
LE: loop exit
PB: predicated region body
PF: predicated region fallthrough
CT: control target
= control target key end

     0   :  { %7 = vsyncpa [#allocation5], 0  ;;  %s254_s0 = inlined_call_operand.hbm [shape: f32[16,128], index: 0, kind: input, shape index: {}]   ;;  %s255_s1 = inlined_call_operand.hbm [shape: f32[16,128], index: 1, kind: input, shape index: {}]   ;;  %s256_s2 = inlined_call_operand.hbm [shape: f32[1,2,8,128], index: 2, kind: output, shape index: {}]  }
   0x1   :  { %8 = vsyncpa [#allocation8], 0 }
   0x2   :  { %9 = vsyncpa [#allocation6], 0  ;;  %s189_s9 = smov [#allocation4]   ;;  %s117_s13 = scalar_lea.hbm %s254_s0, 256 }
   0x3   :  { %s21_s10 = sshll.u32 %s189_s9, 4  ;;  %p118_p0 = scmp.ne.s32.totalorder %s254_s0, %s117_s13  ;;  %s22_s10 = int_to_ptr.vmem [resolvable:$true] %s21_s10 }
   0x4   :  { %p121_p1 = scmp.lt.u32.totalorder %s117_s13, %s254_s0 }
   0x6   :  { %p123_p2 = pnand %p121_p1, %p118_p0 }
   0x8   :  { %126 = shalt.err (!%p123_p2)
}
   0x9   :  { %s127_s18 = scalar_lea.vmem %s22_s10, 256  ;;  %p132_p4 = scmp.lt.s32.totalorder %s22_s10, %s22_s10 }
   0xa   :  { %p128_p3 = scmp.ne.s32.totalorder %s22_s10, %s127_s18  ;;  %p133_p5 = scmp.lt.s32.totalorder %s127_s18, %s127_s18 }
   0xc   :  { %p134_p6 = por %p133_p5, %p132_p4 }
   0xe   :  { %p135_p7 = pnand %p134_p6, %p128_p3 }
  0x10   :  { %138 = shalt.err (!%p135_p7)
}
  0x11   :  { %s190_s19 = smov 128   ;;  %s191_s20 = smov 8  }
  0x12   :  { %27 = dma.hbm_to_vmem [thread:$0]  %s254_s0, 256, %s22_s10, [#allocation5], %s190_s19, %s190_s19, %s191_s20  }
  0x13   :  { %s192_s23 = smov [#allocation7]   ;;  %s139_s27 = scalar_lea.hbm %s255_s1, 256 }
  0x14   :  { %s39_s24 = sshll.u32 %s192_s23, 4  ;;  %p140_p8 = scmp.ne.s32.totalorder %s255_s1, %s139_s27  ;;  %s40_s24 = int_to_ptr.vmem [resolvable:$true] %s39_s24 }
  0x15   :  { %p143_p9 = scmp.lt.u32.totalorder %s139_s27, %s255_s1 }
  0x17   :  { %p145_p10 = pnand %p143_p9, %p140_p8 }
  0x19   :  { %148 = shalt.err (!%p145_p10)
}
  0x1a   :  { %s149_s4 = scalar_lea.vmem %s40_s24, 256  ;;  %p154_p12 = scmp.lt.s32.totalorder %s40_s24, %s40_s24 }
  0x1b   :  { %p150_p11 = scmp.ne.s32.totalorder %s40_s24, %s149_s4  ;;  %p155_p13 = scmp.lt.s32.totalorder %s149_s4, %s149_s4 }
  0x1d   :  { %p156_p0 = por %p155_p13, %p154_p12 }
  0x1f   :  { %p157_p1 = pnand %p156_p0, %p150_p11 }
  0x21   :  { %160 = shalt.err (!%p157_p1)
}
  0x22   :  { %45 = dma.hbm_to_vmem [thread:$0]  %s255_s1, 256, %s40_s24, [#allocation8], %s190_s19, %s190_s19, %s191_s20  }
  0x23   :  { %183 = dma.done.wait [#allocation5], 256  }
  0x24   :  { %184 = vsyncadd [#allocation5], 4294967040 }
  0x25   :  { %185 = dma.done.wait [#allocation8], 256  }
  0x26   :  { %186 = vsyncadd [#allocation8], 4294967040  ;;  %v66_v0 = vld [vmem:[#allocation4] sm:$0xff]  ;;  %v67_v1 = vld [vmem:[#allocation4 + $0x8] sm:$0xff]  ;;  %s193_s6 = smov [#allocation9]  }
  0x27   :  { %v68_v2 = vld [vmem:[#allocation7] sm:$0xff]  ;;  %v69_v3 = vld [vmem:[#allocation7 + $0x8] sm:$0xff]  ;;  %s95_s7 = sshll.u32 %s193_s6, 4  ;;  %s96_s7 = int_to_ptr.vmem [resolvable:$true] %s95_s7 }
  0x28   :  { %v71_v4 = vadd.f32 %v68_v2, %v66_v0  ;;  %v77_v5 = vmul.f32 %v68_v2, %v66_v0  ;;  %v72_v6 = vadd.f32 %v69_v3, %v67_v1  ;;  %v78_v7 = vmul.f32 %v69_v3, %v67_v1  ;;  %s161_s1 = scalar_lea.vmem %s96_s7, 256  ;;  %p166_p3 = scmp.lt.s32.totalorder %s96_s7, %s96_s7 }
  0x29   :  { %p162_p2 = scmp.ne.s32.totalorder %s96_s7, %s161_s1  ;;  %p167_p4 = scmp.lt.s32.totalorder %s161_s1, %s161_s1 }
  0x2a   :  { %v73_v8 = vadd.f32 %v72_v6, %v71_v4  ;;  %v79_v9 = vadd.f32 %v78_v7, %v77_v5 }
  0x2b   :  { %p168_p5 = por %p167_p4, %p166_p3 }
  0x2c   :  { %86 = vst [vmem:[#allocation9] sm:$0xff] %v73_v8  ;;  %89 = vst [vmem:[#allocation9 + $0x8] sm:$0xff] %v79_v9 }
  0x2d   :  { %p169_p6 = pnand %p168_p5, %p162_p2 }
  0x2f   :  { %172 = shalt.err (!%p169_p6)
}
  0x30   :  { %s173_s10 = scalar_lea.hbm %s256_s2, 256 }
  0x31   :  { %p174_p7 = scmp.ne.s32.totalorder %s256_s2, %s173_s10  ;;  %p177_p8 = scmp.lt.u32.totalorder %s173_s10, %s256_s2 }
  0x33   :  { %p179_p9 = pnand %p177_p8, %p174_p7 }
  0x35   :  { %182 = shalt.err (!%p179_p9)
}
  0x36   :  { %101 = dma.vmem_to_hbm [thread:$0]  %s96_s7, 256, %s256_s2, [#allocation6], %s190_s19, %s190_s19, %s191_s20  }
  0x37   :  { %187 = dma.done.wait [#allocation6], 256  }
  0x38   :  { %188 = vsyncadd [#allocation6], 4294967040 }
  0x39   :  { %105 = vsyncpa [#allocation5], 1 }
  0x3a   :  { %106 = vsyncpa [#allocation8], 1 }
  0x3b   :  { %107 = vsyncpa [#allocation6], 1 }

</bundles_post_ra>
